<compile_context>
chip_gen: v6e
topology: v6e:2x2x1
jax: 0.10.0
libtpu: 0.0.40
codegen_flags: <defaults>
</compile_context>

<pallas_src>
import functools

import jax
import jax.numpy as jnp
from jax.experimental import pallas as pl
from jax.experimental.pallas import tpu as pltpu


MAX_NUM_ACTION_CANDIDATES = 8  # small synthetic value (kanachan uses a larger constant)


def _decoder_kernel(x_ref, w1_ref, b1_ref, w2_ref, b2_ref, out_ref, *, activation):
    # x_ref  : (TB, N, D)   bf16/f32  last-N action-candidate rows of one batch tile
    # w1_ref : (D, TF)      bf16      semifinal_linear weight chunk, (in, out) layout
    # b1_ref : (1, TF)      f32       semifinal_linear bias chunk
    # w2_ref : (1, TF)      f32       final_linear weight chunk (single output row)
    # b2_ref : (1,)         f32       final_linear bias (SMEM scalar)
    # out_ref: (TB, N)      f32       resident accumulator over the F-chunk axis
    tb, n, d = x_ref.shape
    f_idx = pl.program_id(1)

    # Initialize the resident output block with the final bias on the first F chunk.
    @pl.when(f_idx == 0)
    def _init():
        out_ref[...] = jnp.zeros_like(out_ref) + b2_ref[0]

    # Merge (batch-tile, candidate) axes: major-dim merge, no relayout cost.
    x = x_ref[...].reshape(tb * n, d).astype(jnp.bfloat16)

    # First linear layer on the MXU: bf16 operands, f32 accumulation.
    h = jnp.dot(x, w1_ref[...], preferred_element_type=jnp.float32)
    h = h + b1_ref[...]

    # TODO(synk): dropout is identity in eval mode; training-mode dropout would
    # use pltpu.prng_seed / pltpu.prng_random_bits.

    if activation == "relu":
        h = jnp.maximum(h, 0.0)
    elif activation == "gelu":
        # exact (erf-based) GELU, matching torch.nn.GELU() default; kept in f32.
        h = 0.5 * h * (1.0 + jax.lax.erf(h * 0.7071067811865476))
    elif activation == "gelu_tanh":
        # tanh approximation: lands on the EUP slot (useful if VALU binds on v5e).
        h = jax.nn.gelu(h, approximate=True)
    else:
        raise ValueError(f"{activation}: invalid activation function")

    # Second linear layer (F -> 1): a 1-column MXU matmul would waste the systolic
    # array, so do VPU multiply + XLU reduction, accumulated per F chunk.
    hw = h * w2_ref[...]                                   # (TB*N, TF)
    partial = jnp.sum(hw.reshape(tb, n, -1), axis=-1)      # (TB, N)
    out_ref[...] += partial


def _pick_f_tile(F, cap=2048):
    """Largest F chunk (multiple of 128, or F itself) bounding the f32 hidden
    intermediate; decouples the batch tile from dim_final_feedforward."""
    if F <= cap:
        return F
    for cand in range(cap, 127, -128):
        if F % cand == 0:
            return cand
    return F  # no clean divisor: fall back to a single chunk


def _auto_batch_tile(B, N, D, f_tile, x_itemsize, *,
                     vmem_budget_bytes, min_x_tile_bytes=1 << 20):
    """Pick TB so each grid step moves >= ~1 MiB of x from HBM while the
    double-buffered x tile + f32 hidden chunk + out accumulator fit the VMEM
    budget.  Re-derive per generation via vmem_budget_bytes (v7x: 64 MiB
    physical / 32 MiB scoped; v5e/v6e: 128 MiB physical)."""
    per_row = N * (2 * D * x_itemsize      # double-buffered x
                   + 4 * f_tile            # f32 hidden chunk
                   + 2 * 4)                # double-buffered f32 out accumulator
    weight_bytes = 2 * (D * f_tile * 2 + 2 * f_tile * 4)
    cap = max(16, (vmem_budget_bytes - weight_bytes) // per_row)
    target = pl.cdiv(min_x_tile_bytes, N * D * x_itemsize)
    tb = int(min(cap, max(16, target)))
    tb = max(16, (tb // 16) * 16)          # keep TB a multiple of 16
    return min(tb, B)


def prepare_params(params):
    """One-time reformatting of PyTorch-layout params (hoisted out of forward)."""
    w1, b1, w2, b2 = params  # w1:(F,D) b1:(F,) w2:(1,F) b2:(1,)  (PyTorch layout)
    f_dim = w1.shape[0]
    w1_t = jnp.transpose(w1).astype(jnp.bfloat16)   # (D, F), bf16 for the MXU
    b1_r = b1.reshape(1, f_dim).astype(jnp.float32)
    w2_r = w2.reshape(1, f_dim).astype(jnp.float32)
    b2_r = b2.reshape(1).astype(jnp.float32)
    return w1_t, b1_r, w2_r, b2_r


def decoder_forward(encode, prepared_params, *, activation="relu", batch_tile=None,
                    f_tile=None, vmem_budget_bytes=24 * 2**20, core_parallel=False):
    """encode: (B, S, D) f32 or bf16 (bf16 recommended: halves HBM read traffic).
    prepared_params: from prepare_params().  Returns (B, N) f32."""
    w1_t, b1_r, w2_r, b2_r = prepared_params
    B, S, D = encode.shape
    N = MAX_NUM_ACTION_CANDIDATES
    F = w1_t.shape[1]
    x_itemsize = jnp.dtype(encode.dtype).itemsize

    # ----- F (hidden-dim) tiling ---------------------------------------------
    if f_tile is None:
        f_tile = _pick_f_tile(F)
    assert F % f_tile == 0, "f_tile must divide dim_final_feedforward"
    num_f = F // f_tile

    # ----- batch tiling --------------------------------------------------------
    if batch_tile is None:
        TB = _auto_batch_tile(B, N, D, f_tile, x_itemsize,
                              vmem_budget_bytes=vmem_budget_bytes)
    else:
        TB = min(batch_tile, B)
    if TB < B:
        TB = max(8, (TB // 8) * 8)     # partial tiles need an 8-aligned out block
    num_b = pl.cdiv(B, TB)

    # ----- fuse `encode[:, -N:, :]` into the x BlockSpec (no wrapper copy) -----
    if S % N == 0:
        seq_blk = S // N - 1           # block index of the last N rows
        x_spec = pl.BlockSpec((TB, N, D), lambda i, f: (i, seq_blk, 0))
    else:
        # element-indexed seq offset: still no wrapper-side slice materialization
        x_spec = pl.BlockSpec((TB, pl.Element(N), D), lambda i, f: (i, S - N, 0))

    # ----- VMEM budgeting / scoped-limit (v5e default is only 16 MiB) ----------
    need = (2 * TB * N * D * x_itemsize               # double-buffered x tile
            + TB * N * f_tile * 4                     # f32 hidden chunk
            + 2 * (D * f_tile * 2 + 2 * f_tile * 4)   # double-buffered weight chunks
            + 2 * TB * N * 4)                         # double-buffered out block
    vmem_limit = int(min(max(2 * need, 32 * 2**20), 64 * 2**20))

    dims = ((pltpu.CORE_PARALLEL if core_parallel else pltpu.PARALLEL),
            pltpu.ARBITRARY)

    kernel = functools.partial(_decoder_kernel, activation=activation)
    out = pl.pallas_call(
        kernel,
        grid=(num_b, num_f),
        in_specs=[
            # x: one (TB, N, D) tile per batch step; constant over the F axis so
            # it is DMA'd once per batch tile and stays resident across F chunks.
            x_spec,
            # weight / bias chunks: pipelined along the F axis (resident if num_f==1).
            pl.BlockSpec((D, f_tile), lambda i, f: (0, f)),
            pl.BlockSpec((1, f_tile), lambda i, f: (0, f)),
            pl.BlockSpec((1, f_tile), lambda i, f: (0, f)),
            pl.BlockSpec(memory_space=pltpu.MemorySpace.SMEM),   # b2 scalar
        ],
        # Full-row (TB, N) output blocks: contiguous writeback DMA, accumulator
        # resident across the F axis.
        out_specs=pl.BlockSpec((TB, N), lambda i, f: (i, 0)),
        out_shape=jax.ShapeDtypeStruct((B, N), jnp.float32),
        compiler_params=pltpu.CompilerParams(
            dimension_semantics=dims,
            vmem_limit_bytes=vmem_limit,
        ),
    )(encode, w1_t, b1_r, w2_r, b2_r)

    return out   # already (B, N) == squeeze(dim=2)


def init_params(key, *, dimension, dim_final_feedforward):
    k1, k2, k3, k4 = jax.random.split(key, 4)
    s1 = 1.0 / jnp.sqrt(dimension)
    s2 = 1.0 / jnp.sqrt(dim_final_feedforward)
    w1 = jax.random.uniform(k1, (dim_final_feedforward, dimension), jnp.float32, -s1, s1)
    b1 = jax.random.uniform(k2, (dim_final_feedforward,), jnp.float32, -s1, s1)
    w2 = jax.random.uniform(k3, (1, dim_final_feedforward), jnp.float32, -s2, s2)
    b2 = jax.random.uniform(k4, (1,), jnp.float32, -s2, s2)
    return w1, b1, w2, b2


if __name__ == "__main__":
    B, S, D, F = 20, 24, 32, 64   # B deliberately NOT a multiple of the batch tile
    N = MAX_NUM_ACTION_CANDIDATES

    key = jax.random.PRNGKey(0)
    k_x, k_p = jax.random.split(key)
    # bf16 at the kernel boundary: halves the HBM read traffic of the x tiles.
    encode = jax.random.normal(k_x, (B, S, D), dtype=jnp.float32).astype(jnp.bfloat16)
    params = init_params(k_p, dimension=D, dim_final_feedforward=F)
    prepped = prepare_params(params)   # one-time weight layout / bf16 cast

    # References share the kernel's bf16-activation / bf16-weight matmul path.
    w1, b1, w2, b2 = params
    x32 = encode.astype(jnp.float32)[:, -N:, :].reshape(B * N, D)

    def reference(act):
        h = jnp.dot(x32.astype(jnp.bfloat16), w1.T.astype(jnp.bfloat16),
                    preferred_element_type=jnp.float32) + b1[None, :]
        if act == "relu":
            h = jnp.maximum(h, 0.0)
        else:
            h = 0.5 * h * (1.0 + jax.lax.erf(h * 0.7071067811865476))
        return (jnp.sum(h * w2, axis=-1) + b2[0]).reshape(B, N)

    # Run 1: ReLU with an explicit batch_tile=16 so B % TB != 0 exercises the
    # partial (row-masked) last batch tile and a multi-step pipelined grid.
    fwd_relu = jax.jit(functools.partial(decoder_forward, activation="relu",
                                         batch_tile=16))
    pred_relu = jax.block_until_ready(fwd_relu(encode, prepped))
    assert pred_relu.shape == (B, N)
    err_r = float(jnp.max(jnp.abs(pred_relu - reference("relu"))))
    assert jnp.allclose(pred_relu, reference("relu"), atol=2e-3, rtol=2e-3), err_r

    # Full-f32 second-layer reference (loose tolerance covers bf16 rounding).
    h32 = jnp.maximum(x32 @ w1.T + b1, 0.0)
    ref_f32 = (h32 @ w2.T + b2)[:, 0].reshape(B, N)
    assert jnp.allclose(pred_relu, ref_f32, atol=5e-2, rtol=5e-2)

    # Run 2: exact GELU with the auto-picked batch tile (single full-batch tile
    # at this small size; scales to >=1 MiB tiles at production batch sizes).
    fwd_gelu = jax.jit(functools.partial(decoder_forward, activation="gelu"))
    pred_gelu = jax.block_until_ready(fwd_gelu(encode, prepped))
    assert pred_gelu.shape == (B, N)
    err_g = float(jnp.max(jnp.abs(pred_gelu - reference("gelu"))))
    assert jnp.allclose(pred_gelu, reference("gelu"), atol=2e-3, rtol=2e-3), err_g

    print("KERNEL_OK")
</pallas_src>

<mosaic_0001>
module attributes {stable_mosaic.version = 11 : i64} {
  func.func @_decoder_kernel(%arg0: i32, %arg1: i32, %arg2: memref<16x8x32xbf16, #tpu.memory_space<vmem>>, %arg3: memref<32x64xbf16, #tpu.memory_space<vmem>>, %arg4: memref<1x64xf32, #tpu.memory_space<vmem>>, %arg5: memref<1x64xf32, #tpu.memory_space<vmem>>, %arg6: memref<1xf32, #tpu.memory_space<smem>>, %arg7: memref<16x8xf32, #tpu.memory_space<vmem>>) attributes {dimension_semantics = [#tpu.dimension_semantics<parallel>, #tpu.dimension_semantics<arbitrary>], iteration_bounds = array<i64: 2, 1>, scalar_prefetch = 0 : i64, scratch_operands = 0 : i64, tpu.core_type = #tpu.core_type<tc>, window_params = [{transform_indices = @transform_0, window_bounds = array<i64: 16, 8, 32>}, {transform_indices = @transform_1, window_bounds = array<i64: 32, 64>}, {transform_indices = @transform_2, window_bounds = array<i64: 1, 64>}, {transform_indices = @transform_3, window_bounds = array<i64: 1, 64>}, {transform_indices = @transform_4, window_bounds = array<i64: 1>}, {transform_indices = @transform_5, window_bounds = array<i64: 16, 8>}]} {
    %c0_i32 = arith.constant 0 : i32
    %0 = arith.cmpi eq, %arg1, %c0_i32 : i32
    %1 = arith.extui %0 : i1 to i32
    %c0_i32_0 = arith.constant 0 : i32
    %2 = arith.cmpi ne, %1, %c0_i32_0 : i32
    scf.if %2 {
      %cst_15 = arith.constant 0.000000e+00 : f32
      %20 = vector.broadcast %cst_15 : f32 to vector<16x8xf32>
      %c0_16 = arith.constant 0 : index
      %21 = memref.load %arg6[%c0_16] : memref<1xf32, #tpu.memory_space<smem>>
      %22 = vector.broadcast %21 : f32 to vector<16x8xf32>
      %23 = arith.addf %20, %22 : vector<16x8xf32>
      %c0_17 = arith.constant 0 : index
      %c0_18 = arith.constant 0 : index
      %24 = vector.load %arg7[%c0_17, %c0_18] : memref<16x8xf32, #tpu.memory_space<vmem>>, vector<16x8xf32>
      tpu.vector_store %arg7[%c0_17, %c0_18], %23 {strides = array<i32>} : memref<16x8xf32, #tpu.memory_space<vmem>>, vector<16x8xf32>,
    } else {
    }
    %c0 = arith.constant 0 : index
    %c0_1 = arith.constant 0 : index
    %c0_2 = arith.constant 0 : index
    %3 = vector.load %arg2[%c0, %c0_1, %c0_2] : memref<16x8x32xbf16, #tpu.memory_space<vmem>>, vector<16x8x32xbf16>
    %4 = vector.shape_cast %3 : vector<16x8x32xbf16> to vector<128x32xbf16>
    %c0_3 = arith.constant 0 : index
    %c0_4 = arith.constant 0 : index
    %5 = vector.load %arg3[%c0_3, %c0_4] : memref<32x64xbf16, #tpu.memory_space<vmem>>, vector<32x64xbf16>
    %cst = arith.constant dense<0.000000e+00> : vector<128x64xf32>
    %6 = tpu.matmul %4, %5, %cst {dimension_numbers = #tpu.dot_dimension_numbers<[1], [0], [0], [1], [0, 0, 1, 1], [], []>} : vector<128x32xbf16>, vector<32x64xbf16>, vector<128x64xf32> -> vector<128x64xf32>
    %c0_5 = arith.constant 0 : index
    %c0_6 = arith.constant 0 : index
    %7 = vector.load %arg4[%c0_5, %c0_6] : memref<1x64xf32, #tpu.memory_space<vmem>>, vector<1x64xf32>
    %8 = vector.broadcast %7 : vector<1x64xf32> to vector<128x64xf32>
    %9 = arith.addf %6, %8 : vector<128x64xf32>
    %cst_7 = arith.constant 0.000000e+00 : f32
    %10 = vector.broadcast %cst_7 : f32 to vector<128x64xf32>
    %11 = arith.maximumf %9, %10 : vector<128x64xf32>
    %c0_8 = arith.constant 0 : index
    %c0_9 = arith.constant 0 : index
    %12 = vector.load %arg5[%c0_8, %c0_9] : memref<1x64xf32, #tpu.memory_space<vmem>>, vector<1x64xf32>
    %13 = vector.broadcast %12 : vector<1x64xf32> to vector<128x64xf32>
    %14 = arith.mulf %11, %13 : vector<128x64xf32>
    %15 = vector.shape_cast %14 : vector<128x64xf32> to vector<16x8x64xf32>
    %cst_10 = arith.constant dense<0.000000e+00> : vector<16x8xf32>
    %16 = vector.multi_reduction <add>, %15, %cst_10 [2] : vector<16x8x64xf32> to vector<16x8xf32>
    %c0_11 = arith.constant 0 : index
    %c0_12 = arith.constant 0 : index
    %17 = vector.load %arg7[%c0_11, %c0_12] : memref<16x8xf32, #tpu.memory_space<vmem>>, vector<16x8xf32>
    %18 = arith.addf %17, %16 : vector<16x8xf32>
    %c0_13 = arith.constant 0 : index
    %c0_14 = arith.constant 0 : index
    %19 = vector.load %arg7[%c0_13, %c0_14] : memref<16x8xf32, #tpu.memory_space<vmem>>, vector<16x8xf32>
    tpu.vector_store %arg7[%c0_13, %c0_14], %18 {strides = array<i32>} : memref<16x8xf32, #tpu.memory_space<vmem>>, vector<16x8xf32>,
    return
  }
  func.func @transform_0(%arg0: i32, %arg1: i32) -> (i32, i32, i32) {
    %c2_i32 = arith.constant 2 : i32
    %c0_i32 = arith.constant 0 : i32
    %c0_i32_0 = arith.constant 0 : i32
    return %arg0, %c2_i32, %c0_i32 : i32, i32, i32
  }
  func.func @transform_1(%arg0: i32, %arg1: i32) -> (i32, i32) {
    %c0_i32 = arith.constant 0 : i32
    %c0_i32_0 = arith.constant 0 : i32
    return %c0_i32, %arg1 : i32, i32
  }
  func.func @transform_2(%arg0: i32, %arg1: i32) -> (i32, i32) {
    %c0_i32 = arith.constant 0 : i32
    %c0_i32_0 = arith.constant 0 : i32
    return %c0_i32, %arg1 : i32, i32
  }
  func.func @transform_3(%arg0: i32, %arg1: i32) -> (i32, i32) {
    %c0_i32 = arith.constant 0 : i32
    %c0_i32_0 = arith.constant 0 : i32
    return %c0_i32, %arg1 : i32, i32
  }
  func.func @transform_4(%arg0: i32, %arg1: i32) -> i32 {
    %c0_i32 = arith.constant 0 : i32
    %c0_i32_0 = arith.constant 0 : i32
    return %c0_i32 : i32
  }
  func.func @transform_5(%arg0: i32, %arg1: i32) -> (i32, i32) {
    %c0_i32 = arith.constant 0 : i32
    %c0_i32_0 = arith.constant 0 : i32
    return %arg0, %c0_i32 : i32, i32
  }
}

</mosaic_0001>

<bundles_post_ra>
// kernel: decoder_forward.1
= control target key start
LH: loop header
LB: loop body
LE: loop exit
PB: predicated region body
PF: predicated region fallthrough
CT: control target
= control target key end

     0   :  { %s1713_s0 = inlined_call_operand.hbm [shape: bf16[20,24,32], index: 0, kind: input, shape index: {}]   ;;  %s1714_s1 = inlined_call_operand.hbm [shape: bf16[32,64], index: 1, kind: input, shape index: {}]   ;;  %s1715_s2 = inlined_call_operand.vmem [shape: f32[1,64], index: 2, kind: input, shape index: {}]   ;;  %s1716_s3 = inlined_call_operand.vmem [shape: f32[1,64], index: 3, kind: input, shape index: {}]   ;;  %s1717_s4 = inlined_call_operand.<no memory space> [shape: f32[1], index: 4, kind: input, shape index: {}]   ;;  %s1718_s5 = inlined_call_operand.vmem [shape: f32[20,8], index: 5, kind: output, shape index: {}]  }
   0x1   :  { %10 = sst [smem:[#allocation2]] %s1717_s4 }
   0x2   :  { %11 = vsyncpa [#allocation4], 0 }
   0x3   :  { %13 = vsyncpa [#allocation4 + $0x1], 0 }
   0x4   :  { %14 = vsyncpa [#allocation6], 0  ;;  %s1454_s20 = smov 0   ;;  %s1456_s21 = smov 0  }
   0x5   :  { %s1458_s22 = smov 0   ;;  %s1460_s23 = smov 0  }
   0x6   :  { %s1462_s24 = smov 0   ;;  %s1464_s25 = smov 0  }
   0x7 LB: > { %s1009_s4 = sadd.s32 4294967295, %s1380_s25   ;;  %s32_s26 = sadd.s32 1, %s1376_s24  ;;  %s1380_s25 = sphi %s1464_s25, %s20_s25   ;;  %s1376_s24 = sphi %s1462_s24, %s1731_s24   ;;  %s1372_s23 = sphi %s1460_s23, %s1730_s23   ;;  %s1368_s22 = sphi %s1458_s22, %s1729_s22   ;;  %s1364_s21 = sphi %s1456_s21, %s1728_s21   ;;  %s1360_s20 = sphi %s1454_s20, %s1727_s20  }
   0x8   : > { %p34_p0 = scmp.ge.s32.totalorder %s32_s26, 2  ;;  %s39_s27 = sadd.s32 1, %s1368_s22 }
   0x9   : > { %p46_p1 = scmp.ne.s32.totalorder %s1368_s22, %s1364_s21  ;;  %p47_p2 = scmp.eq.s32.totalorder %s1380_s25, 0 }
   0xa   : > { %s1733_s26 = smov (%p34_p0, %s32_s26), 0  ;;  %p52_p4 = scmp.ne.s32.totalorder %s1364_s21, %s1360_s20 }
   0xb   : > { %p1490_p3 = por %p47_p2, %p46_p1  ;;  %s36_s29 = ssub.s32 %s1376_s24, %s1733_s26 }
   0xc   : > { %p1497_p5 = scmp.eq.s32.totalorder %s1009_s4, 0  ;;  %p37_p6 = scmp.eq.s32.totalorder %s36_s29, 0 }
   0xd   : > { %p175_p7 = scmp.eq.s32.totalorder %s1009_s4, 1  ;;  %p1011_p9 = scmp.ge.s32.totalorder %s1380_s25, 1 }
   0xe   : > { %p1503_p8 = por %p1497_p5, %p52_p4  ;;  %p188_p11 = scmp.lt.s32.totalorder %s1380_s25, 3 }
   0xf   : > { %s1509_s7 = scalar_select %p37_p6, %s1368_s22, %s39_s27  }
  0x10   : > { %s1722_s6 = scalar_select %p1503_p8, 1, 0 }
  0x11   : > { %p1511_p10 = por %p175_p7, %p46_p1  ;;  %p1516_p12 = pnand %p1011_p9, %p188_p11 }
  0x12   : > { %s1414_s10 = smov [#allocation5]  }
  0x13   : > { %s1723_s8 = scalar_select %p1511_p10, 1, 0 }
  0x14   : > { %s202_s11 = sshll.u32 %s1414_s10, 4  ;;  %p1106_p13 = pneg %p1516_p12  ;;  %s203_s11 = int_to_ptr.vmem [resolvable:$true] %s202_s11 }
  0x15   : > { %s1251_s12 = scalar_lea.vmem %s203_s11, 256  ;;  %p1259_p7 = scmp.lt.s32.totalorder %s203_s11, %s203_s11 }
  0x16   : > { %p1107_p0 = pnand %p1106_p13, %p1497_p5  ;;  %p1252_p4 = scmp.ne.s32.totalorder %s203_s11, %s1251_s12 }
  0x17   : > { %p1260_p10 = scmp.lt.s32.totalorder %s1251_s12, %s1251_s12 }
  0x18   : > { %p1242_p2 = pneg %p1107_p0 }
  0x19   : > { %p1261_p8 = por %p1260_p10, %p1259_p7 }
  0x1a   : > { %p1254_p1 = pnand %p1252_p4, %p1242_p2 }
  0x1c   : > { %p1255_p6 = pneg %p1254_p1 }
  0x1e   : > { %p1262_p9 = pnand %p1261_p8, %p1255_p6 }
  0x20   : > { %1265 = shalt.err (!%p1262_p9)
}
  0x21   : > { %s1415_s13 = smov 64   ;;  %s1416_s14 = smov 4  }
  0x22   : > { %1109 = dma.hbm_to_vmem [thread:$0]  (!%p1107_p0), %s1714_s1, 256, %s203_s11, [#allocation6], %s1415_s13, %s1415_s13, %s1416_s14  }
  0x23   : > { %p1015_p11 = scmp.ge.s32.totalorder %s1380_s25, 2 }
  0x25   : > { %227 = sbr.rel (%p1015_p11) target bundleno = 77 (0x4d), region = 32 }
  0x2a   : > { %230 = sbr.rel (!%p1490_p3) target bundleno = 77 (0x4d), region = 36  ;;  %s231_s17 = sand.u32 (%p1490_p3), 1, %s1368_s22  }
  0x2b   : > { %s1017_s18 = sshll.u32 (%p1490_p3), %s1376_s24, 4  ;;  %s1016_s19 = sshll.u32 (%p1490_p3), %s231_s17, 6 }
  0x2c   : > { %s237_s20 = ssub.s32 (%p1490_p3), 20, %s1017_s18  ;;  %s1535_s29 = scalar_lea.sflag (%p1490_p3), [#allocation4], %s231_s17 }
  0x2d   : > { %p238_p8 = scmp.lt.s32.totalorder (%p1490_p3), %s237_s20, 16  ;;  %s235_s10 = scalar_lea.vmem (%p1490_p3), [#allocation3], %s1016_s19 }
  0x2f   : > { %s1735_s20 = smov (!%p238_p8, %s237_s20), 16 }
  0x30   : > { %s1532_s4 = sshll.u32 %s1735_s20, 6 }
  0x31   : > { %s242_s27 = ssub.s32 1024, %s1532_s4 }
  0x32   : > { %243 = vsyncadd %s1535_s29, %s242_s27  ;;  %p1019_p3 = scmp.ne.s32.totalorder %s1532_s4, 0  ;;  %s1020_s28 = smul.u32 3072, %s1376_s24 }
  0x33   : > { %s250_s11 = sshll.u32 %s235_s10, 4  ;;  %s1270_s20 = scalar_lea.hbm %s1713_s0, 3840  ;;  %s1545_s11 = int_to_ptr.vmem [resolvable:$true] %s250_s11 }
  0x34   : > { %s1543_s14 = scalar_lea.hbm %s1713_s0, %s1020_s28 }
  0x35   : > { %s879_s15 = scalar_lea.hbm %s1543_s14, 128  ;;  %s1292_s16 = scalar_lea.hbm %s1543_s14, %s1532_s4 }
  0x36   : > { %s1293_s17 = scalar_lea.hbm %s1292_s16, 128 }
  0x37   : > { %p1267_p10 = scmp.ne.s32.totalorder %s879_s15, %s1293_s17  ;;  %p1272_p2 = scmp.lt.s32.totalorder %s1270_s20, %s1293_s17 }
  0x39   : > { %p1268_p13 = pnand %p1267_p10, %p1019_p3 }
  0x3b   : > { %p1269_p0 = pneg %p1268_p13 }
  0x3d   : > { %p1274_p4 = pnand %p1272_p2, %p1269_p0 }
  0x3f   : > { %1277 = shalt.err (!%p1274_p4)
}
  0x40   : > { %s1278_s27 = scalar_lea.vmem %s1545_s11, %s1532_s4  ;;  %s1417_s10 = smov [#allocation3]  }
  0x41   : > { %p1279_p1 = scmp.ne.s32.totalorder %s1545_s11, %s1278_s27  ;;  %s1282_s28 = sshll.u32 %s1417_s10, 4  ;;  %s1283_s28 = int_to_ptr.vmem [resolvable:$false] %s1282_s28 }
  0x42   : > { %s1284_s12 = scalar_lea.vmem %s1283_s28, 2048  ;;  %p1285_p9 = scmp.lt.s32.totalorder %s1545_s11, %s1283_s28 }
  0x43   : > { %p1280_p6 = pnand %p1279_p1, %p1019_p3  ;;  %p1286_p11 = scmp.lt.s32.totalorder %s1284_s12, %s1278_s27 }
  0x45   : > { %p1281_p7 = pneg %p1280_p6  ;;  %p1287_p8 = por %p1286_p11, %p1285_p9 }
  0x47   : > { %p1288_p10 = pnand %p1287_p8, %p1281_p7 }
  0x49   : > { %1291 = shalt.err (!%p1288_p10)
}
  0x4a   : > { %s1418_s13 = smov 192   ;;  %s1419_s16 = smov 64  }
  0x4b   : > { %s1420_s17 = smov 4  }
  0x4c   : > { %256 = dma.hbm_to_vmem [thread:$0]  (%p1019_p3), %s879_s15, %s1532_s4, %s1545_s11, %s1535_s29, %s1418_s13, %s1419_s16, %s1420_s17  }
  0x4d PF: > { %262 = sbr.rel (%p1516_p12) target bundleno = 506 (0x1fa), region = 40  ;;  %s1573_s18 = sand.u32 (!%p1516_p12), 1, %s1364_s21  }
  0x4e   : > { %s1024_s19 = sshll.u32 (!%p1516_p12), %s1573_s18, 6  ;;  %s265_s20 = scalar_lea.sflag (!%p1516_p12), [#allocation4], %s1573_s18 }
  0x4f   : > { %s268_s27 = scalar_lea.vmem (!%p1516_p12), [#allocation3], %s1024_s19  ;;  %p1725_p13 = scmp.ne.s32.totalorder (!%p1516_p12), %s1722_s6, 0 }
  0x52   : > { %1351 = dma.done.wait (%p1725_p13), %s265_s20, 1024  }
  0x53   : > { %1353 = vsyncadd (%p1725_p13), %s265_s20, 4294966272 }
  0x54   : > { %1355 = dma.done.wait (%p1497_p5), [#allocation6], 256  }
  0x55   : > { %1357 = vsyncadd (%p1497_p5), [#allocation6], 4294967040  ;;  %v1230_v0 = vld [vmem:[#allocation5 + $0x8] sm:$0xff]   ;;  %v1231_v1 = vld [vmem:[#allocation5] sm:$0xff]   ;;  %vm410_vm0 = vcmask 261120   ;;  %vm571_vm1 = vcmask 523264  }
  0x56   : > { %1077 = vmatprep.subr.bf16.mxu0 %v1230_v0  ;;  %1097 = vmatprep.subr.bf16.mxu1 %v1230_v0  ;;  %v1232_v2 = vld [vmem:[%s268_s27] sm:$0xff]   ;;  %v1234_v4 = vld [vmem:[%s268_s27 + $0x8] sm:$0xff]   ;;  %v1236_v6 = vld [vmem:[%s268_s27 + $0x10] sm:$0xff]   ;;  %s325_s29 = sld [smem:[#allocation2]]  ;;  %s1026_s11 = sshll.u32 %s1573_s18, 4  ;;  %vm328_vm2 = vcmask 64512  }
  0x57   : > { %1078 = vmatpush3.bf16.msra.mxu0 %v1230_v0  ;;  %1099 = vmatpush3.bf16.msra.mxu1 %v1230_v0  ;;  %v1233_v3 = vld [vmem:[%s268_s27 + $0x20] sm:$0xff]   ;;  %v1235_v5 = vld [vmem:[%s268_s27 + $0x28] sm:$0xff]   ;;  %v1237_v7 = vld [vmem:[%s268_s27 + $0x30] sm:$0xff]   ;;  %s1652_s14 = scalar_lea.vmem [#allocation7], %s1026_s11   ;;  %vm704_vm3 = vcmask 1041409   ;;  %vm706_vm4 = vcmask 1042434  }
  0x58   : > { %1079 = vmatprep.subr.bf16.mxu0 %v1231_v1  ;;  %1098 = vmatprep.subr.bf16.mxu1 %v1231_v1  ;;  %v1238_v8 = vld [vmem:[%s268_s27 + $0x18] sm:$0xff]   ;;  %v1596_v10 = vld [vmem:[%s1715_s2] ss:$0 sm:$0xff]  ;;  %vm708_vm5 = vcmask 1043459   ;;  %vm710_vm6 = vcmask 1044484   ;;  %vm712_vm7 = vcmask 1045509  }
  0x59   : > { %1081 = vmatprep.mubr.msk.bf16.mxu0 %vm410_vm0, %v1232_v2  ;;  %1089 = vmatprep.mubr.msk.bf16.mxu1 %vm410_vm0, %v1233_v3  ;;  %v1239_v9 = vld [vmem:[%s268_s27 + $0x38] sm:$0xff]   ;;  %v1605_v21 = vld [vmem:[%s1716_s3] ss:$0 sm:$0xff]  ;;  %vm714_vm8 = vcmask 1046534   ;;  %vm716_vm9 = vcmask 1047559   ;;  %p1726_p5 = scmp.ne.s32.totalorder %s1723_s8, 0 }
  0x5a   : > { %s1048_s15 = sshll.u32 (%p1726_p5), %s1372_s23, 1  ;;  %s1064_s10 = sshll.u32 (%p1726_p5), %s1372_s23, 4 }
  0x5b   : > { %1080 = vmatpush3.bf16.msra.mxu0 %v1231_v1  ;;  %1100 = vmatpush3.bf16.msra.mxu1 %v1231_v1  ;;  %s740_s28 = ssub.s32 (%p1726_p5), 3, %s1048_s15  ;;  %s1671_s16 = scalar_lea.vmem (%p1726_p5), %s1718_s5, %s1064_s10  }
  0x5c   : > { %p741_p12 = scmp.lt.s32.totalorder (%p1726_p5), %s740_s28, 2 }
  0x5e   : > { %1082 = vmatmul.mubr.msk.bf16.vlgmr.msra.gmra.mxu0 %vm410_vm0, %v1234_v4  ;;  %1090 = vmatmul.mubr.msk.bf16.vlgmr.msra.gmra.mxu1 %vm410_vm0, %v1235_v5 }
  0x5f   : > { %1085 = vmatprep.mubr.msk.bf16.mxu0 %vm410_vm0, %v1236_v6  ;;  %1093 = vmatprep.mubr.msk.bf16.mxu1 %vm410_vm0, %v1237_v7 }
  0x66   : > { %1086 = vmatmul.mubr.msk.bf16.gmra.mxu0 %vm410_vm0, %v1238_v8  ;;  %1094 = vmatmul.mubr.msk.bf16.gmra.mxu1 %vm410_vm0, %v1239_v9 }
 0x11e   : > { %v1083_v11 = vpop.f32.mrf.mxu0  ;;  %v1091_v12 = vpop.f32.mrf.mxu1 }
 0x11f   : > { %v478_v13 = vadd.f32 %v1083_v11, %v1596_v10  ;;  %v510_v14 = vadd.f32 %v1091_v12, %v1596_v10 }
 0x120   : > { %v469_v15 = vpop.f32.mrf.mxu0  ;;  %v501_v16 = vpop.f32.mrf.mxu1 }
 0x121   : > { %v534_v17 = vmax.f32 %v478_v13, 0.0  ;;  %v542_v18 = vmax.f32 %v510_v14, 0.0  ;;  %v470_v19 = vadd.f32 %v1596_v10, %v469_v15  ;;  %v502_v20 = vadd.f32 %v1596_v10, %v501_v16 }
 0x122   : > { %v1084_v22 = vpop.f32.mrf.mxu0  ;;  %v1092_v23 = vpop.f32.mrf.mxu1 }
 0x123   : > { %v532_v24 = vmax.f32 %v470_v19, 0.0  ;;  %v540_v25 = vmax.f32 %v502_v20, 0.0  ;;  %v481_v26 = vadd.f32 %v1084_v22, %v1596_v10  ;;  %v513_v27 = vadd.f32 %v1092_v23, %v1596_v10 }
 0x124   : > { %v472_v28 = vpop.f32.mrf.mxu0  ;;  %v504_v29 = vpop.f32.mrf.mxu1  ;;  %v565_v30 = vmul.f32 %v1605_v21, %v542_v18  ;;  %v557_v31 = vmul.f32 %v1605_v21, %v534_v17 }
 0x125   : > { %v535_v32 = vmax.f32 %v481_v26, 0.0  ;;  %v543_v33 = vmax.f32 %v513_v27, 0.0  ;;  %v473_v34 = vadd.f32 %v1596_v10, %v472_v28  ;;  %v505_v35 = vadd.f32 %v1596_v10, %v504_v29 }
 0x126   : > { %v602_v36 = vsel %vm571_vm1, %v565_v30, 0.0  ;;  %v578_v37 = vsel %vm571_vm1, %v557_v31, 0.0  ;;  %v1087_v38 = vpop.f32.mrf.mxu0  ;;  %v1095_v39 = vpop.f32.mrf.mxu1  ;;  %v563_v40 = vmul.f32 %v1605_v21, %v540_v25  ;;  %v555_v41 = vmul.f32 %v1605_v21, %v532_v24 }
 0x127   : > { %603 = vadd.xlane.f32.xlu1 %v602_v36  ;;  %579 = vadd.xlane.f32.xlu0 %v578_v37  ;;  %v494_v42 = vadd.f32 %v1087_v38, %v1596_v10  ;;  %v526_v43 = vadd.f32 %v1095_v39, %v1596_v10  ;;  %v533_v46 = vmax.f32 %v473_v34, 0.0  ;;  %v541_v47 = vmax.f32 %v505_v35, 0.0 }
 0x128   : > { %v517_v44 = vpop.f32.mrf.mxu1  ;;  %v485_v45 = vpop.f32.mrf.mxu0  ;;  %v596_v48 = vsel %vm571_vm1, %v563_v40, 0.0  ;;  %v572_v49 = vsel %vm571_vm1, %v555_v41, 0.0  ;;  %v566_v50 = vmul.f32 %v1605_v21, %v543_v33  ;;  %v558_v51 = vmul.f32 %v1605_v21, %v535_v32 }
 0x129   : > { %v538_v54 = vmax.f32 %v494_v42, 0.0  ;;  %v546_v55 = vmax.f32 %v526_v43, 0.0  ;;  %v518_v56 = vadd.f32 %v1596_v10, %v517_v44  ;;  %v486_v57 = vadd.f32 %v1596_v10, %v485_v45 }
 0x12a   : > { %v1088_v52 = vpop.f32.mrf.mxu0  ;;  %v1096_v53 = vpop.f32.mrf.mxu1  ;;  %v605_v58 = vsel %vm571_vm1, %v566_v50, 0.0  ;;  %v581_v59 = vsel %vm571_vm1, %v558_v51, 0.0  ;;  %v564_v60 = vmul.f32 %v1605_v21, %v541_v47  ;;  %v556_v61 = vmul.f32 %v1605_v21, %v533_v46 }
 0x12b   : > { %597 = vadd.xlane.f32.xlu1 %v596_v48  ;;  %573 = vadd.xlane.f32.xlu0 %v572_v49  ;;  %v569_v0 = vmul.f32 %v1605_v21, %v546_v55  ;;  %v561_v1 = vmul.f32 %v1605_v21, %v538_v54  ;;  %v544_v2 = vmax.f32 %v518_v56, 0.0  ;;  %v536_v3 = vmax.f32 %v486_v57, 0.0 }
 0x12c   : > { %v520_v62 = vpop.f32.mrf.mxu1  ;;  %v488_v63 = vpop.f32.mrf.mxu0  ;;  %v599_v6 = vsel %vm571_vm1, %v564_v60, 0.0  ;;  %v575_v7 = vsel %vm571_vm1, %v556_v61, 0.0  ;;  %v497_v11 = vadd.f32 %v1088_v52, %v1596_v10  ;;  %v529_v12 = vadd.f32 %v1096_v53, %v1596_v10 }
 0x12d   : > { %v521_v4 = vadd.f32 %v1596_v10, %v520_v62  ;;  %v489_v5 = vadd.f32 %v1596_v10, %v488_v63  ;;  %v614_v8 = vsel %vm571_vm1, %v569_v0, 0.0  ;;  %v590_v9 = vsel %vm571_vm1, %v561_v1, 0.0 }
 0x12e   : > { %v567_v15 = vmul.f32 %v1605_v21, %v544_v2  ;;  %v559_v16 = vmul.f32 %v1605_v21, %v536_v3  ;;  %v539_v17 = vmax.f32 %v497_v11, 0.0  ;;  %v547_v18 = vmax.f32 %v529_v12, 0.0 }
 0x12f   : > { %606 = vadd.xlane.f32.xlu1 %v605_v58  ;;  %582 = vadd.xlane.f32.xlu0 %v581_v59  ;;  %v545_v13 = vmax.f32 %v521_v4, 0.0  ;;  %v537_v14 = vmax.f32 %v489_v5, 0.0  ;;  %v326_v29 = vstv %s325_s29  ;;  %v638_v33 = vlaneseq }
 0x130   : > { %v608_v19 = vsel %vm571_vm1, %v567_v15, 0.0  ;;  %v584_v20 = vsel %vm571_vm1, %v559_v16, 0.0  ;;  %v570_v25 = vmul.f32 %v1605_v21, %v547_v18  ;;  %v562_v26 = vmul.f32 %v1605_v21, %v539_v17  ;;  %330 = vst.msk [vmem:[%s1652_s14 + $0x8] sm:$0xff] %vm328_vm2, %v326_v29  ;;  %329 = vst.msk [vmem:[%s1652_s14] sm:$0xff] %vm328_vm2, %v326_v29 }
 0x131   : > { %v568_v22 = vmul.f32 %v1605_v21, %v545_v13  ;;  %v560_v23 = vmul.f32 %v1605_v21, %v537_v14  ;;  %v639_v36 = vand.u32 127, %v638_v33  ;;  %v641_v37 = vshrl.u32 %v638_v33, 7 }
 0x132   : > { %v617_v27 = vsel %vm571_vm1, %v570_v25, 0.0  ;;  %v593_v28 = vsel %vm571_vm1, %v562_v26, 0.0 }
 0x133   : > { %600 = vadd.xlane.f32.xlu1 %v599_v6  ;;  %576 = vadd.xlane.f32.xlu0 %v575_v7  ;;  %v611_v10 = vsel %vm571_vm1, %v568_v22, 0.0  ;;  %v587_v24 = vsel %vm571_vm1, %v560_v23, 0.0  ;;  %v642_v40 = vsub.s32 %v639_v36, %v641_v37 }
 0x137   : > { %615 = vadd.xlane.f32.xlu1 %v614_v8  ;;  %591 = vadd.xlane.f32.xlu0 %v590_v9  ;;  %v621_v9 = vld [vmem:[%s1652_s14 + $0x8] sm:$0xff]  ;;  %v620_v12 = vld [vmem:[%s1652_s14] sm:$0xff] }
 0x13b   : > { %609 = vadd.xlane.f32.xlu1 %v608_v19  ;;  %585 = vadd.xlane.f32.xlu0 %v584_v20 }
 0x13f   : > { %612 = vadd.xlane.f32.xlu1 %v611_v10  ;;  %588 = vadd.xlane.f32.xlu0 %v587_v24 }
 0x143   : > { %618 = vadd.xlane.f32.xlu1 %v617_v27  ;;  %594 = vadd.xlane.f32.xlu0 %v593_v28 }
 0x1b0   : > { %v604_v21 = vpop.xlane.xlu1 %603  ;;  %v580_v30 = vpop.xlane.xlu0 %579 }
 0x1b1   : > { %v683_v49 = vrot.slane %v604_v21, %v642_v40  ;;  %v651_v50 = vrot.slane %v580_v30, %v642_v40 }
 0x1b4   : > { %v598_v31 = vpop.xlane.xlu1 %597  ;;  %v574_v32 = vpop.xlane.xlu0 %573 }
 0x1b5   : > { %v675_v45 = vrot.slane %v598_v31, %v642_v40  ;;  %v643_v46 = vrot.slane %v574_v32, %v642_v40 }
 0x1b8   : > { %v607_v34 = vpop.xlane.xlu1 %606  ;;  %v583_v35 = vpop.xlane.xlu0 %582 }
 0x1b9   : > { %v687_v57 = vrot.slane %v607_v34, %v642_v40  ;;  %v655_v58 = vrot.slane %v583_v35, %v642_v40 }
 0x1bc   : > { %v601_v38 = vpop.xlane.xlu1 %600  ;;  %v577_v39 = vpop.xlane.xlu0 %576 }
 0x1bd   : > { %v679_v41 = vrot.slane %v601_v38, %v642_v40  ;;  %v647_v42 = vrot.slane %v577_v39, %v642_v40 }
 0x1bf   : > { %v718_v47 = vsel %vm704_vm3, %v679_v41, %v675_v45  ;;  %v705_v48 = vsel %vm704_vm3, %v647_v42, %v643_v46 }
 0x1c0   : > { %v616_v43 = vpop.xlane.xlu1 %615  ;;  %v592_v44 = vpop.xlane.xlu0 %591  ;;  %v719_v53 = vsel %vm706_vm4, %v683_v49, %v718_v47  ;;  %v707_v54 = vsel %vm706_vm4, %v651_v50, %v705_v48 }
 0x1c1   : > { %v720_v61 = vsel %vm708_vm5, %v687_v57, %v719_v53  ;;  %v709_v62 = vsel %vm708_vm5, %v655_v58, %v707_v54  ;;  %v699_v5 = vrot.slane %v616_v43, %v642_v40  ;;  %v667_v6 = vrot.slane %v592_v44, %v642_v40 }
 0x1c4   : > { %v610_v51 = vpop.xlane.xlu1 %609  ;;  %v586_v52 = vpop.xlane.xlu0 %585 }
 0x1c5   : > { %v691_v55 = vrot.slane %v610_v51, %v642_v40  ;;  %v659_v56 = vrot.slane %v586_v52, %v642_v40 }
 0x1c7   : > { %v721_v1 = vsel %vm710_vm6, %v691_v55, %v720_v61  ;;  %v711_v2 = vsel %vm710_vm6, %v659_v56, %v709_v62 }
 0x1c8   : > { %v613_v59 = vpop.xlane.xlu1 %612  ;;  %v589_v60 = vpop.xlane.xlu0 %588 }
 0x1c9   : > { %v695_v63 = vrot.slane %v613_v59, %v642_v40  ;;  %v663_v0 = vrot.slane %v589_v60, %v642_v40 }
 0x1cb   : > { %v722_v3 = vsel %vm712_vm7, %v695_v63, %v721_v1  ;;  %v713_v4 = vsel %vm712_vm7, %v663_v0, %v711_v2 }
 0x1cc   : > { %v619_v7 = vpop.xlane.xlu1 %618  ;;  %v595_v8 = vpop.xlane.xlu0 %594  ;;  %v723_v14 = vsel %vm714_vm8, %v699_v5, %v722_v3  ;;  %v715_v15 = vsel %vm714_vm8, %v667_v6, %v713_v4 }
 0x1cd   : > { %v703_v11 = vrot.slane %v619_v7, %v642_v40  ;;  %v671_v13 = vrot.slane %v595_v8, %v642_v40 }
 0x1ce   : > { %738 = sbr.rel (!%p1726_p5) target bundleno = 506 (0x1fa), region = 56 }
 0x1cf   : > { %v724_v16 = vsel %vm716_vm9, %v703_v11, %v723_v14  ;;  %v717_v17 = vsel %vm716_vm9, %v671_v13, %v715_v15 }
 0x1d0   : > { %v728_v18 = vadd.f32 %v724_v16, %v621_v9  ;;  %v727_v19 = vadd.f32 %v717_v17, %v620_v12 }
 0x1d2   : > { %731 = vst.msk [vmem:[%s1652_s14 + $0x8] sm:$0xff] %vm328_vm2, %v728_v18  ;;  %730 = vst.msk [vmem:[%s1652_s14] sm:$0xff] %vm328_vm2, %v727_v19 }
 0x1d3   : > { %s1737_s28 = smov (!%p741_p12, %s740_s28), 2 }
 0x1d4   : > { %s1049_s17 = sshll.u32 %s1737_s28, 7 }
 0x1d5   : > { %p1052_p3 = scmp.eq.s32.totalorder %s1049_s17, 0 }
 0x1d6   : > { %s1677_s8 = sshrl.u32 (!%p1052_p3), %s1737_s28, 1 }
 0x1d7   : > { %749 = sbr.rel (%p1052_p3) target bundleno = 506 (0x1fa), region = 60  ;;  %p1053_p0 = scmp.le.s32.totalorder (!%p1052_p3), %s1677_s8, 0 }
 0x1dc   : > { %927 = sbr.rel (%p1053_p0) target bundleno = 489 (0x1e9), region = 149  ;;  %s1382_s23 = smov (!%p1053_p0), %s1671_s16  }
 0x1dd   : > { %s1386_s18 = smov (!%p1053_p0), %s1652_s14   ;;  %s1390_s19 = smov (!%p1053_p0), 0  }
 0x1de   : > { %s1394_s20 = smov (!%p1053_p0), 0  }
 0x1e1 LB: >> { %v814_v20 = vld [vmem:[%s1388_s18] sm:$0xff]  ;;  %v816_v22 = vld [vmem:[%s1388_s18 + $0x8] sm:$0xff]  ;;  %s818_s27 = sadd.s32 1, %s1392_s19  ;;  %s808_s20 = sadd.s32 1, %s1396_s20   ;;  %s1396_s20 = sphi %s1394_s20, %s808_s20   ;;  %s1392_s19 = sphi %s1390_s19, %s1391_s19   ;;  %s1388_s18 = sphi %s1386_s18, %s823_s18   ;;  %s1384_s23 = sphi %s1382_s23, %s824_s23  }
 0x1e2   : >> { %815 = vst [vmem:[%s1384_s23] sm:$0xff] %v814_v20  ;;  %817 = vst [vmem:[%s1384_s23 + $0x8] sm:$0xff] %v816_v22  ;;  %p819_p2 = scmp.ge.s32.totalorder %s818_s27, %s1677_s8  ;;  %p807_p4 = scmp.ge.s32.totalorder %s808_s20, %s1677_s8 }
 0x1e4   : >> { %s1739_s27 = smov (%p819_p2, %s818_s27), 0  ;;  %810 = sbr.rel (!%p807_p4) target bundleno = 481 (0x1e1), region = 155 }
 0x1e5   : >> { %s1054_s30 = sshll.u32 %s1739_s27, 4  ;;  %s1391_s19 = smov %s1739_s27  }
 0x1e6   : >> { %s823_s18 = scalar_lea.vmem %s1652_s14, %s1054_s30 [#allocation7]   ;;  %s824_s23 = scalar_lea.vmem %s1671_s16, %s1054_s30  }
 0x1e9 PF: > { %s1687_s6 = sand.u32 1, %s1737_s28   ;;  %s1065_s9 = sshll.u32 %s1677_s8, 4 }
 0x1ea   : > { %s829_s4 = scalar_lea.vmem %s1652_s14, %s1065_s9 [#allocation7]   ;;  %s831_s29 = scalar_lea.vmem %s1671_s16, %s1065_s9  }
 0x1eb   : > { %p1059_p1 = scmp.le.s32.totalorder %s1687_s6, 0 }
 0x1ec   : > { %s1398_s11 = smov (!%p1059_p1), %s831_s29   ;;  %s1402_s15 = smov (!%p1059_p1), %s829_s4  }
 0x1ed   : > { %941 = sbr.rel (%p1059_p1) target bundleno = 506 (0x1fa), region = 160  ;;  %s1406_s10 = smov (!%p1059_p1), 0  }
 0x1ee   : > { %s1410_s12 = smov (!%p1059_p1), 0  }
 0x1f2 LB: >> { %v841_v23 = vld [vmem:[%s1404_s15] sm:$0xff]  ;;  %s843_s28 = sadd.s32 1, %s1408_s10  ;;  %s835_s12 = sadd.s32 1, %s1412_s12   ;;  %s1412_s12 = sphi %s1410_s12, %s835_s12   ;;  %s1408_s10 = sphi %s1406_s10, %s1407_s10   ;;  %s1404_s15 = sphi %s1402_s15, %s848_s15   ;;  %s1400_s11 = sphi %s1398_s11, %s849_s11  }
 0x1f3   : >> { %842 = vst [vmem:[%s1400_s11] sm:$0xff] %v841_v23  ;;  %p844_p6 = scmp.ge.s32.totalorder %s843_s28, %s1687_s6  ;;  %p834_p7 = scmp.ge.s32.totalorder %s835_s12, %s1687_s6 }
 0x1f5   : >> { %s1741_s28 = smov (%p844_p6, %s843_s28), 0  ;;  %837 = sbr.rel (!%p834_p7) target bundleno = 498 (0x1f2), region = 166 }
 0x1f6   : >> { %s1060_s14 = sshll.u32 %s1741_s28, 3  ;;  %s1407_s10 = smov %s1741_s28  }
 0x1f7   : >> { %s848_s15 = scalar_lea.vmem %s829_s4, %s1060_s14 [#allocation7]   ;;  %s849_s11 = scalar_lea.vmem %s831_s29, %s1060_s14  }
 0x1fa PF: > { %s20_s25 = sadd.s32 1, %s1380_s25   ;;  %s1727_s20 = smov %s1364_s21 }
 0x1fb   : > { %p17_p9 = scmp.ge.s32.totalorder %s20_s25, 4   ;;  %s1728_s21 = smov %s1368_s22 }
 0x1fc   : > { %s1729_s22 = smov %s1509_s7  ;;  %s1730_s23 = smov %s1376_s24 }
 0x1fd   : > { %s1731_s24 = smov %s1733_s26  ;;  %19 = sbr.rel (!%p17_p9) target bundleno = 7 (0x7), region = 177 }
 0x202   :  { %865 = vsyncpa [#allocation4], 1 }
 0x203   :  { %867 = vsyncpa [#allocation4 + $0x1], 1 }
 0x204   :  { %868 = vsyncpa [#allocation6], 1 }

</bundles_post_ra>
